<compile_context>
chip_gen: v7x
topology: tpu7x:2x2x1
jax: 0.10.0
libtpu: 0.0.40
codegen_flags: <defaults>
</compile_context>

<pallas_src>
import functools

import jax
import jax.numpy as jnp
from jax import lax
from jax.experimental import pallas as pl
from jax.experimental.pallas import tpu as pltpu


def _round_up(x, m):
    return (x + m - 1) // m * m


def _layout(O, A, Hp, Hv):
    """Row layout of the packed parameter slab and the packed output slab."""
    kp = _round_up(O + Hp + 1, 8)        # [obs | hp | 1]          -> Hp
    kpo = _round_up(Hp + 1, 8)           # [hp' | 1]               -> A
    kv = _round_up(Hp + A + Hv + 1, 8)   # [hp' | onehot | hv | 1] -> Hv
    kvo = _round_up(Hv + 1, 8)           # [hv' | 1]               -> 1
    rp, rpo, rv, rvo = 0, kp, kp + kpo, kp + kpo + kv
    rows = kp + kpo + kv + kvo
    cols = max(Hp, Hv, A, 1)
    out_w = _round_up(Hp + Hv + A + 2, 128)   # hp'|hv'|dist|value|action + pad
    return dict(O=O, A=A, Hp=Hp, Hv=Hv,
                kp=kp, kpo=kpo, kv=kv, kvo=kvo,
                rp=rp, rpo=rpo, rv=rv, rvo=rvo,
                rows=rows, cols=cols, out_w=out_w)


def _cat(parts, axis=1):
    parts = [p for p in parts if p.shape[axis] > 0]
    return jnp.concatenate(parts, axis=axis)


def actor_critic_kernel(*refs, cfg, stochastic):
    f32 = jnp.float32
    if stochastic:
        obs_ref, hp_ref, hv_ref, w_ref, u_ref, out_ref = refs
    else:
        obs_ref, hp_ref, hv_ref, w_ref, out_ref = refs
        u_ref = None

    O, A, Hp, Hv = cfg["O"], cfg["A"], cfg["Hp"], cfg["Hv"]
    kp, kpo, kv, kvo = cfg["kp"], cfg["kpo"], cfg["kv"], cfg["kvo"]
    rp, rpo, rv, rvo = cfg["rp"], cfg["rpo"], cfg["rv"], cfg["rvo"]

    obs = obs_ref[...]
    hp = hp_ref[...]
    hv = hv_ref[...]
    B = obs.shape[0]
    one = jnp.ones((B, 1), f32)

    # ---- Policy RNN cell (fused matmul): hp' = relu([obs|hp|1|0pad] @ Wp_aug)
    comb_p = _cat([obs, hp, one, jnp.zeros((B, kp - (O + Hp + 1)), f32)])
    hp_new = jnp.maximum(
        jnp.dot(comb_p, w_ref[rp:rp + kp, :Hp], preferred_element_type=f32), 0.0)

    # ---- Policy head: logits = [hp'|1|0pad] @ Wpo_aug
    comb_po = _cat([hp_new, one, jnp.zeros((B, kpo - (Hp + 1)), f32)])
    logits = jnp.dot(comb_po, w_ref[rpo:rpo + kpo, :A],
                     preferred_element_type=f32)

    # ---- Action selection.
    #   deterministic: per-row argmax of logits (first max index).
    #   stochastic   : Gumbel-max => exact Categorical(softmax(logits)) sample.
    idx = lax.broadcasted_iota(jnp.int32, logits.shape, 1)
    if stochastic:
        u = u_ref[...]
        gumbel = -jnp.log(-jnp.log(u))            # EUP ops, off the VALU path
        score = logits + gumbel
    else:
        score = logits
    score_max = jnp.max(score, axis=1, keepdims=True)
    action = jnp.min(jnp.where(score == score_max, idx, jnp.int32(A)),
                     axis=1, keepdims=True)                      # [B, 1] int32
    onehot = (idx == action).astype(f32)                         # [B, A]

    # ---- softmax(dim=1); independent of the action/value branch.
    row_max = jnp.max(logits, axis=1, keepdims=True)
    e = jnp.exp(logits - row_max)
    dist = e * pl.reciprocal(jnp.sum(e, axis=1, keepdims=True), approx=True)

    # ---- Value RNN cell (fused matmul): hv' = relu([hp'|onehot|hv|1|0pad] @ Wv_aug)
    comb_v = _cat([hp_new, onehot, hv, one,
                   jnp.zeros((B, kv - (Hp + A + Hv + 1)), f32)])
    hv_new = jnp.maximum(
        jnp.dot(comb_v, w_ref[rv:rv + kv, :Hv], preferred_element_type=f32), 0.0)

    # ---- Value head: value = [hv'|1|0pad] @ Wvo_aug
    comb_vo = _cat([hv_new, one, jnp.zeros((B, kvo - (Hv + 1)), f32)])
    value = jnp.dot(comb_vo, w_ref[rvo:rvo + kvo, :1],
                    preferred_element_type=f32)

    # ---- Single lane-dense output slab: [hp' | hv' | dist | value | action | 0]
    pad = cfg["out_w"] - (Hp + Hv + A + 2)
    out_ref[...] = _cat([hp_new, hv_new, dist, value,
                         action.astype(f32), jnp.zeros((B, pad), f32)])


def pack_params(params, observation_size, action_size,
                hidden_policy_size, hidden_value_size):
    """Pack all weights/biases into one (rows, cols) f32 slab, bias folded as
    an extra weight row (matched by a constant-1 lane appended in-kernel)."""
    L = _layout(observation_size, action_size,
                hidden_policy_size, hidden_value_size)
    slab = jnp.zeros((L["rows"], L["cols"]), jnp.float32)

    def put(slab, r0, blocks, n):
        w = jnp.concatenate(blocks, axis=0).astype(jnp.float32)   # [K, n]
        return slab.at[r0:r0 + w.shape[0], :n].set(w)

    slab = put(slab, L["rp"],
               [params["w_op"], params["w_pp"], params["b_p"]], L["Hp"])
    slab = put(slab, L["rpo"],
               [params["w_po"], params["b_po"]], L["A"])
    slab = put(slab, L["rv"],
               [params["w_vp"], params["w_va"], params["w_vv"], params["b_v"]],
               L["Hv"])
    slab = put(slab, L["rvo"],
               [params["w_vo"], params["b_vo"]], 1)
    return slab


def actor_critic_forward(obs, hidden_policy, hidden_value, w_slab, *,
                         action_size, deterministic=True, key=None):
    B, O = obs.shape
    Hp = hidden_policy.shape[1]
    Hv = hidden_value.shape[1]
    A = action_size
    L = _layout(O, A, Hp, Hv)

    stochastic = not deterministic
    kernel = functools.partial(actor_critic_kernel, cfg=L, stochastic=stochastic)
    vmem = pl.BlockSpec(memory_space=pltpu.MemorySpace.VMEM)

    inputs = [obs, hidden_policy, hidden_value, w_slab]
    in_specs = [vmem, vmem, vmem, vmem]
    if stochastic:
        if key is None:
            key = jax.random.PRNGKey(0)
        # Uniform(0,1) noise for the in-kernel Gumbel-max categorical sample.
        u = jax.random.uniform(key, (B, A), jnp.float32,
                               minval=1e-7, maxval=1.0)
        inputs.append(u)
        in_specs.append(vmem)

    slab = pl.pallas_call(
        kernel,
        out_shape=jax.ShapeDtypeStruct((B, L["out_w"]), jnp.float32),
        in_specs=in_specs,
        out_specs=vmem,
    )(*inputs)

    hp_new = slab[:, :Hp]
    hv_new = slab[:, Hp:Hp + Hv]
    dist = slab[:, Hp + Hv:Hp + Hv + A]
    value = slab[:, Hp + Hv + A:Hp + Hv + A + 1]
    action = slab[:, Hp + Hv + A + 1:Hp + Hv + A + 2].astype(jnp.int32)
    return action, value, hp_new, hv_new, dist


def init_params(key, observation_size, action_size,
                hidden_policy_size, hidden_value_size):
    ks = jax.random.split(key, 10)
    s = 0.1

    def w(k, shape):
        return (s * jax.random.normal(k, shape)).astype(jnp.float32)

    return {
        # Policy RNN: input=[obs, hp] -> hp ; head hp -> A
        "w_op": w(ks[0], (observation_size, hidden_policy_size)),
        "w_pp": w(ks[1], (hidden_policy_size, hidden_policy_size)),
        "b_p":  w(ks[2], (1, hidden_policy_size)),
        "w_po": w(ks[3], (hidden_policy_size, action_size)),
        "b_po": w(ks[4], (1, action_size)),
        # Value RNN: input=[hp', onehot(A), hv] -> hv ; head hv -> 1
        "w_vp": w(ks[5], (hidden_policy_size, hidden_value_size)),
        "w_va": w(ks[6], (action_size, hidden_value_size)),
        "w_vv": w(ks[7], (hidden_value_size, hidden_value_size)),
        "b_v":  w(ks[8], (1, hidden_value_size)),
        "w_vo": w(ks[9], (hidden_value_size, 1)),
        "b_vo": jnp.zeros((1, 1), jnp.float32),
    }


def reference_policy(obs, hp, params):
    hp_new = jnp.maximum(obs @ params["w_op"] + hp @ params["w_pp"] + params["b_p"], 0.0)
    logits = hp_new @ params["w_po"] + params["b_po"]
    dist = jax.nn.softmax(logits, axis=1)
    return hp_new, logits, dist


def reference_value(hp_new, action, hv, params, action_size):
    onehot = jax.nn.one_hot(action[:, 0], action_size, dtype=jnp.float32)
    hv_new = jnp.maximum(hp_new @ params["w_vp"] + onehot @ params["w_va"]
                         + hv @ params["w_vv"] + params["b_v"], 0.0)
    value = hv_new @ params["w_vo"] + params["b_vo"]
    return hv_new, value


def reference_forward(obs, hp, hv, params):
    """Pure-JAX reference of the deterministic forward pass."""
    hp_new, logits, dist = reference_policy(obs, hp, params)
    action = jnp.argmax(logits, axis=1, keepdims=True).astype(jnp.int32)
    hv_new, value = reference_value(hp_new, action, hv, params,
                                    params["w_va"].shape[0])
    return action, value, hp_new, hv_new, dist


if __name__ == "__main__":
    B = 2
    observation_size = 16
    action_size = 8
    hidden_policy_size = 32
    hidden_value_size = 32

    key = jax.random.PRNGKey(0)
    k_obs, k_hp, k_hv, k_param = jax.random.split(key, 4)

    obs = jax.random.normal(k_obs, (B, observation_size), dtype=jnp.float32)
    hidden_policy = jax.random.normal(k_hp, (B, hidden_policy_size), dtype=jnp.float32)
    hidden_value = jax.random.normal(k_hv, (B, hidden_value_size), dtype=jnp.float32)
    params = init_params(k_param, observation_size, action_size,
                         hidden_policy_size, hidden_value_size)
    w_slab = pack_params(params, observation_size, action_size,
                         hidden_policy_size, hidden_value_size)

    # ---- Deterministic path (argmax action) ----
    action, value, hp_new, hv_new, action_dist = jax.block_until_ready(
        actor_critic_forward(obs, hidden_policy, hidden_value, w_slab,
                             action_size=action_size, deterministic=True))

    assert action.shape == (B, 1) and action.dtype == jnp.int32
    assert value.shape == (B, 1)
    assert hp_new.shape == (B, hidden_policy_size)
    assert hv_new.shape == (B, hidden_value_size)
    assert action_dist.shape == (B, action_size)

    r_action, r_value, r_hp, r_hv, r_dist = reference_forward(
        obs, hidden_policy, hidden_value, params)
    assert jnp.array_equal(action, r_action)
    assert jnp.allclose(hp_new, r_hp, rtol=1e-4, atol=1e-4)
    assert jnp.allclose(hv_new, r_hv, rtol=1e-4, atol=1e-4)
    assert jnp.allclose(value, r_value, rtol=1e-4, atol=1e-4)
    assert jnp.allclose(action_dist, r_dist, atol=5e-3)   # approx reciprocal
    assert jnp.allclose(jnp.sum(action_dist, axis=1), 1.0, atol=5e-3)

    # ---- Stochastic path (Categorical sample via Gumbel-max, PyTorch default) ----
    k_sample = jax.random.PRNGKey(1)
    action_s, value_s, hp_s, hv_s, dist_s = jax.block_until_ready(
        actor_critic_forward(obs, hidden_policy, hidden_value, w_slab,
                             action_size=action_size, deterministic=False,
                             key=k_sample))
    assert action_s.shape == (B, 1) and action_s.dtype == jnp.int32
    assert bool(jnp.all((action_s >= 0) & (action_s < action_size)))
    # Policy branch does not depend on the sampled action.
    assert jnp.allclose(hp_s, r_hp, rtol=1e-4, atol=1e-4)
    assert jnp.allclose(dist_s, r_dist, atol=5e-3)
    # Value branch must be consistent with the sampled action.
    r_hv_s, r_value_s = reference_value(r_hp, action_s, hidden_value, params,
                                        action_size)
    assert jnp.allclose(hv_s, r_hv_s, rtol=1e-4, atol=1e-4)
    assert jnp.allclose(value_s, r_value_s, rtol=1e-4, atol=1e-4)

    print("KERNEL_OK")
</pallas_src>

<mosaic_0001>
module attributes {stable_mosaic.version = 11 : i64} {
  func.func @actor_critic_kernel(%arg0: memref<2x16xf32, #tpu.memory_space<vmem>>, %arg1: memref<2x32xf32, #tpu.memory_space<vmem>>, %arg2: memref<2x32xf32, #tpu.memory_space<vmem>>, %arg3: memref<216x32xf32, #tpu.memory_space<vmem>>, %arg4: memref<2x128xf32, #tpu.memory_space<vmem>>) attributes {dimension_semantics = [], scalar_prefetch = 0 : i64, scratch_operands = 0 : i64, tpu.core_type = #tpu.core_type<tc>} {
    %c0 = arith.constant 0 : index
    %c0_0 = arith.constant 0 : index
    %0 = vector.load %arg0[%c0, %c0_0] : memref<2x16xf32, #tpu.memory_space<vmem>>, vector<2x16xf32>
    %c0_1 = arith.constant 0 : index
    %c0_2 = arith.constant 0 : index
    %1 = vector.load %arg1[%c0_1, %c0_2] : memref<2x32xf32, #tpu.memory_space<vmem>>, vector<2x32xf32>
    %c0_3 = arith.constant 0 : index
    %c0_4 = arith.constant 0 : index
    %2 = vector.load %arg2[%c0_3, %c0_4] : memref<2x32xf32, #tpu.memory_space<vmem>>, vector<2x32xf32>
    %cst = arith.constant 1.000000e+00 : f32
    %3 = vector.broadcast %cst : f32 to vector<2x1xf32>
    %cst_5 = arith.constant 0.000000e+00 : f32
    %4 = vector.broadcast %cst_5 : f32 to vector<2x7xf32>
    %5 = tpu.concatenate %0, %1, %3, %4 in 1 : vector<2x16xf32>, vector<2x32xf32>, vector<2x1xf32>, vector<2x7xf32> -> vector<2x56xf32>
    %c0_6 = arith.constant 0 : index
    %c0_7 = arith.constant 0 : index
    %6 = vector.load %arg3[%c0_6, %c0_7] : memref<216x32xf32, #tpu.memory_space<vmem>>, vector<56x32xf32>
    %cst_8 = arith.constant dense<0.000000e+00> : vector<2x32xf32>
    %7 = tpu.matmul %5, %6, %cst_8 {dimension_numbers = #tpu.dot_dimension_numbers<[1], [0], [0], [1], [0, 0, 1, 1], [], []>} : vector<2x56xf32>, vector<56x32xf32>, vector<2x32xf32> -> vector<2x32xf32>
    %cst_9 = arith.constant 0.000000e+00 : f32
    %8 = vector.broadcast %cst_9 : f32 to vector<2x32xf32>
    %9 = arith.maximumf %7, %8 : vector<2x32xf32>
    %cst_10 = arith.constant 0.000000e+00 : f32
    %10 = vector.broadcast %cst_10 : f32 to vector<2x7xf32>
    %11 = tpu.concatenate %9, %3, %10 in 1 : vector<2x32xf32>, vector<2x1xf32>, vector<2x7xf32> -> vector<2x40xf32>
    %c56 = arith.constant 56 : index
    %c0_11 = arith.constant 0 : index
    %12 = vector.load %arg3[%c56, %c0_11] : memref<216x32xf32, #tpu.memory_space<vmem>>, vector<40x8xf32>
    %cst_12 = arith.constant dense<0.000000e+00> : vector<2x8xf32>
    %13 = tpu.matmul %11, %12, %cst_12 {dimension_numbers = #tpu.dot_dimension_numbers<[1], [0], [0], [1], [0, 0, 1, 1], [], []>} : vector<2x40xf32>, vector<40x8xf32>, vector<2x8xf32> -> vector<2x8xf32>
    %14 = tpu.iota {dimensions = array<i32: 1>} : vector<2x8xi32>
    %cst_13 = arith.constant dense<0xFF800000> : vector<2xf32>
    %15 = vector.multi_reduction <maximumf>, %13, %cst_13 [1] : vector<2x8xf32> to vector<2xf32>
    %16 = vector.shape_cast %15 : vector<2xf32> to vector<2x1xf32>
    %17 = vector.broadcast %16 : vector<2x1xf32> to vector<2x8xf32>
    %18 = arith.cmpf oeq, %13, %17 : vector<2x8xf32>
    %c8_i32 = arith.constant 8 : i32
    %19 = vector.broadcast %c8_i32 : i32 to vector<2x8xi32>
    %20 = arith.select %18, %14, %19 : vector<2x8xi1>, vector<2x8xi32>
    %cst_14 = arith.constant dense<2147483647> : vector<2xi32>
    %21 = vector.multi_reduction <minsi>, %20, %cst_14 [1] : vector<2x8xi32> to vector<2xi32>
    %22 = vector.shape_cast %21 : vector<2xi32> to vector<2x1xi32>
    %23 = vector.broadcast %22 : vector<2x1xi32> to vector<2x8xi32>
    %24 = arith.cmpi eq, %14, %23 : vector<2x8xi32>
    %25 = arith.extui %24 : vector<2x8xi1> to vector<2x8xi32>
    %26 = arith.sitofp %25 : vector<2x8xi32> to vector<2x8xf32>
    %cst_15 = arith.constant dense<0xFF800000> : vector<2xf32>
    %27 = vector.multi_reduction <maximumf>, %13, %cst_15 [1] : vector<2x8xf32> to vector<2xf32>
    %28 = vector.shape_cast %27 : vector<2xf32> to vector<2x1xf32>
    %29 = vector.broadcast %28 : vector<2x1xf32> to vector<2x8xf32>
    %30 = arith.subf %13, %29 : vector<2x8xf32>
    %31 = math.exp %30 : vector<2x8xf32>
    %cst_16 = arith.constant dense<0.000000e+00> : vector<2xf32>
    %32 = vector.multi_reduction <add>, %31, %cst_16 [1] : vector<2x8xf32> to vector<2xf32>
    %33 = vector.shape_cast %32 : vector<2xf32> to vector<2x1xf32>
    %34 = tpu.reciprocal %33 {approx = true} : vector<2x1xf32> -> vector<2x1xf32>
    %35 = vector.broadcast %34 : vector<2x1xf32> to vector<2x8xf32>
    %36 = arith.mulf %31, %35 : vector<2x8xf32>
    %cst_17 = arith.constant 0.000000e+00 : f32
    %37 = vector.broadcast %cst_17 : f32 to vector<2x7xf32>
    %38 = tpu.concatenate %9, %26, %2, %3, %37 in 1 : vector<2x32xf32>, vector<2x8xf32>, vector<2x32xf32>, vector<2x1xf32>, vector<2x7xf32> -> vector<2x80xf32>
    %c96 = arith.constant 96 : index
    %c0_18 = arith.constant 0 : index
    %39 = vector.load %arg3[%c96, %c0_18] : memref<216x32xf32, #tpu.memory_space<vmem>>, vector<80x32xf32>
    %cst_19 = arith.constant dense<0.000000e+00> : vector<2x32xf32>
    %40 = tpu.matmul %38, %39, %cst_19 {dimension_numbers = #tpu.dot_dimension_numbers<[1], [0], [0], [1], [0, 0, 1, 1], [], []>} : vector<2x80xf32>, vector<80x32xf32>, vector<2x32xf32> -> vector<2x32xf32>
    %cst_20 = arith.constant 0.000000e+00 : f32
    %41 = vector.broadcast %cst_20 : f32 to vector<2x32xf32>
    %42 = arith.maximumf %40, %41 : vector<2x32xf32>
    %cst_21 = arith.constant 0.000000e+00 : f32
    %43 = vector.broadcast %cst_21 : f32 to vector<2x7xf32>
    %44 = tpu.concatenate %42, %3, %43 in 1 : vector<2x32xf32>, vector<2x1xf32>, vector<2x7xf32> -> vector<2x40xf32>
    %c176 = arith.constant 176 : index
    %c0_22 = arith.constant 0 : index
    %45 = vector.load %arg3[%c176, %c0_22] : memref<216x32xf32, #tpu.memory_space<vmem>>, vector<40x1xf32>
    %cst_23 = arith.constant dense<0.000000e+00> : vector<2x1xf32>
    %46 = tpu.matmul %44, %45, %cst_23 {dimension_numbers = #tpu.dot_dimension_numbers<[1], [0], [0], [1], [0, 0, 1, 1], [], []>} : vector<2x40xf32>, vector<40x1xf32>, vector<2x1xf32> -> vector<2x1xf32>
    %47 = arith.sitofp %22 : vector<2x1xi32> to vector<2x1xf32>
    %cst_24 = arith.constant 0.000000e+00 : f32
    %48 = vector.broadcast %cst_24 : f32 to vector<2x54xf32>
    %49 = tpu.concatenate %9, %42, %36, %46, %47, %48 in 1 : vector<2x32xf32>, vector<2x32xf32>, vector<2x8xf32>, vector<2x1xf32>, vector<2x1xf32>, vector<2x54xf32> -> vector<2x128xf32>
    %c0_25 = arith.constant 0 : index
    %c0_26 = arith.constant 0 : index
    %50 = vector.load %arg4[%c0_25, %c0_26] : memref<2x128xf32, #tpu.memory_space<vmem>>, vector<2x128xf32>
    tpu.vector_store %arg4[%c0_25, %c0_26], %49 {strides = array<i32>} : memref<2x128xf32, #tpu.memory_space<vmem>>, vector<2x128xf32>,
    return
  }
}

</mosaic_0001>

<bundles_post_ra>
// kernel: tpu_custom_call.1
= control target key start
LH: loop header
LB: loop body
LE: loop exit
PB: predicated region body
PF: predicated region fallthrough
CT: control target
= control target key end

     0   :  { %s619_s21 = smov 16   ;;  %v620_v3 = vmov 0.0|0.0   ;;  %vm621_vm0 = vmmov 0   ;;  %v622_v8 = vmov 0.0   ;;  %s806_s0 = inlined_call_operand.vmem [shape: f32[2,16], index: 0, kind: input, shape index: {}]   ;;  %s807_s1 = inlined_call_operand.vmem [shape: f32[2,32], index: 1, kind: input, shape index: {}]   ;;  %s808_s2 = inlined_call_operand.vmem [shape: f32[2,32], index: 2, kind: input, shape index: {}]   ;;  %s809_s3 = inlined_call_operand.vmem [shape: f32[216,32], index: 3, kind: input, shape index: {}]   ;;  %s810_s4 = inlined_call_operand.hbm [shape: f32[2,128], index: 4, kind: output, shape index: {}]  }
   0x1   :  { %v19_v0 = vld [vmem:[%s807_s1] sm:$0x3]  ;;  %v32_v2 = vld [vmem:[%s809_s3 + $0x8] sm:$0xff]  ;;  %546 = vmatprep.subr.bf16.mxu0 %v620_v3  ;;  %v33_v5 = vld [vmem:[%s809_s3 + $0x10] sm:$0xff]  ;;  %555 = vmatprep.subr.bf16.mxu1 %v620_v3 }
   0x2   :  { %v31_v1 = vld [vmem:[%s809_s3] sm:$0xff]  ;;  %22 = vrot.lane.b32.xlu0 %v19_v0, %s619_s21  ;;  %v34_v6 = vld [vmem:[%s809_s3 + $0x18] sm:$0xff]  ;;  %494 = vmatprep.mubr.msk.f32.mxu0 %vm621_vm0, %v622_v8 }
   0x3   :  { %v547_v4 = vpack.c.bf16 %v32_v2, %v31_v1  ;;  %v550_v7 = vpack.c.bf16 %v34_v6, %v33_v5  ;;  %v117_v9 = vld [vmem:[%s809_s3 + $0x38] sm:$0xff]  ;;  %v118_v10 = vld [vmem:[%s809_s3 + $0x40] sm:$0xff] }
   0x5   :  { %548 = vmatpush3.bf16.msra.mxu0 %v547_v4 }
   0x6   :  { %9 = vsyncpa [#allocation3], 0  ;;  %549 = vmatprep.subr.bf16.mxu0 %v620_v3  ;;  %v35_v11 = vld [vmem:[%s809_s3 + $0x20] sm:$0xff]  ;;  %v36_v12 = vld [vmem:[%s809_s3 + $0x28] sm:$0xff]  ;;  %v556_v13 = vpack.c.bf16 %v118_v10, %v117_v9  ;;  %507 = vmatprep.mubr.msk.f32.mxu1 %vm621_vm0, %v622_v8  ;;  %vm25_vm1 = vcmask 130048   ;;  %vm27_vm2 = vcmask 392192   ;;  %v196_v33 = vlaneseq }
   0x7   :  { %v553_v14 = vpack.c.bf16 %v36_v12, %v35_v11  ;;  %v37_v15 = vld [vmem:[%s809_s3 + $0x30] sm:$0xff]  ;;  %v18_v16 = vld [vmem:[%s806_s0] sm:$0x3]  ;;  %vm29_vm3 = vcmask 400384   ;;  %vm38_vm4 = vcmask 457728   ;;  %v119_v21 = vld [vmem:[%s809_s3 + $0x48] sm:$0xff] }
   0x8   :  { %557 = vmatpush3.bf16.msra.mxu1 %v556_v13  ;;  %v120_v22 = vld [vmem:[%s809_s3 + $0x50] sm:$0xff]  ;;  %v121_v24 = vld [vmem:[%s809_s3 + $0x58] sm:$0xff]  ;;  %vm113_vm5 = vcmask 261120   ;;  %vm115_vm6 = vcmask 269312   ;;  %vm122_vm7 = vcmask 326656   ;;  %vm198_vm8 = vcmask 58368  }
   0x9   :  { %551 = vmatpush3.bf16.msra.mxu0 %v550_v7  ;;  %558 = vmatprep.subr.bf16.mxu1 %v620_v3  ;;  %v559_v23 = vpack.c.bf16 %v120_v22, %v119_v21  ;;  %v197_v34 = vand.u32 127, %v196_v33  ;;  %v244_v44 = vld [vmem:[%s809_s3 + $0x60] sm:$0xff]  ;;  %v245_v45 = vld [vmem:[%s809_s3 + $0x68] sm:$0xff]  ;;  %v246_v46 = vld [vmem:[%s809_s3 + $0x70] sm:$0xff]  ;;  %s623_s9 = smov 32   ;;  %s624_s12 = smov 40  }
   0xa   :  { %552 = vmatprep.subr.bf16.mxu0 %v620_v3  ;;  %v562_v47 = vpack.c.bf16 %v245_v45, %v244_v44  ;;  %v247_v48 = vld [vmem:[%s809_s3 + $0x78] sm:$0xff]  ;;  %v248_v50 = vld [vmem:[%s809_s3 + $0x80] sm:$0xff]  ;;  %v249_v51 = vld [vmem:[%s809_s3 + $0x88] sm:$0xff]  ;;  %vm240_vm12 = vcmask 588800   ;;  %vm242_vm13 = vcmask 596992   ;;  %vm254_vm14 = vcmask 654336  }
   0xb   :  { %v565_v49 = vpack.c.bf16 %v247_v48, %v246_v46  ;;  %v568_v52 = vpack.c.bf16 %v249_v51, %v248_v50  ;;  %v250_v53 = vld [vmem:[%s809_s3 + $0x90] sm:$0xff]  ;;  %v251_v54 = vld [vmem:[%s809_s3 + $0x98] sm:$0xff]  ;;  %v252_v56 = vld [vmem:[%s809_s3 + $0xa0] sm:$0xff]  ;;  %s625_s15 = smov 64   ;;  %s626_s22 = smov 72   ;;  %vm423_vm15 = vcmask 523264  }
   0xc   :  { %560 = vmatpush3.bf16.msra.mxu1 %v559_v23  ;;  %v571_v55 = vpack.c.bf16 %v251_v54, %v250_v53  ;;  %v253_v57 = vld [vmem:[%s809_s3 + $0xa8] sm:$0xff]  ;;  %v20_v1 = vld [vmem:[%s808_s2] sm:$0x3] }
   0xd   :  { %554 = vmatpush3.bf16.msra.mxu0 %v553_v14  ;;  %505 = vmatprep.subr.mxu1 %v622_v8  ;;  %v574_v58 = vpack.c.bf16 %v253_v57, %v252_v56  ;;  %v334_v21 = vld [vmem:[%s809_s3 + $0xc8] sm:$0xff] }
   0xe   :  { %492 = vmatprep.subr.mxu0 %v622_v8 }
  0x10   :  { %506 = vmatpush3.msra.mxu1 %v121_v24 }
  0x11   :  { %493 = vmatpush3.msra.mxu0 %v37_v15  ;;  %561 = vmatprep.subr.bf16.mxu1 %v620_v3  ;;  %v331_v15 = vld [vmem:[%s809_s3 + $0xb0] sm:$0xff] }
  0x12   :  { %576 = vmatprep.subr.bf16.mxu0 %v620_v3 }
  0x74   :  { %v23_v17 = vpop.permute.xlu0 %22 }
  0x75   :  { %v26_v18 = vsel %vm25_vm1, %v18_v16, %v23_v17  ;;  %v332_v16 = vld [vmem:[%s809_s3 + $0xb8] sm:$0xff] }
  0x76   :  { %v28_v19 = vsel %vm27_vm2, %v26_v18, 1.0  ;;  %v577_v17 = vpack.c.bf16 %v332_v16, %v331_v15 }
  0x77   :  { %v30_v20 = vsel %vm29_vm3, %v28_v19, 0.0 }
  0x78   :  { %495 = vmatmul.mubr.msk.f32.vlgmr.msra.gmra.mrb[0].mxu0 %vm38_vm4, %v30_v20  ;;  %v333_v20 = vld [vmem:[%s809_s3 + $0xc0] sm:$0xff] }
  0x79   :  { %543 = vmatprep.mubr.msk.f32.mxu0 %vm621_vm0, %v622_v8  ;;  %578 = vmatpush3.bf16.msra.mxu0 %v577_v17  ;;  %v580_v22 = vpack.c.bf16 %v334_v21, %v333_v20 }
  0x7a   :  { %579 = vmatprep.subr.bf16.mxu0 %v620_v3 }
  0x7d   :  { %581 = vmatpush3.bf16.msra.mxu0 %v580_v22 }
  0x7e   :  { %541 = vmatprep.subr.mxu0 %v622_v8 }
 0x14b   :  { %v108_v25 = vpop.f32.mrb[0].mxu0 }
 0x14c   :  { %v710_v26 = vmax.f32 %v108_v25, 0.0  ;;  %v496_v27 = vpop.f32.mrb[1].mxu0 }
 0x14e   :  { %v114_v28 = vsel %vm113_vm5, %v710_v26, 1.0 }
 0x14f   :  { %v116_v29 = vsel %vm115_vm6, %v114_v28, 0.0 }
 0x150   :  { %508 = vmatmul.mubr.msk.f32.vlgmr.msra.gmra.mrb[0].mxu1 %vm122_vm7, %v116_v29 }
 0x151   :  { %530 = vmatprep.mubr.msk.f32.mxu1 %vm621_vm0, %v622_v8  ;;  %563 = vmatpush3.bf16.msra.mxu1 %v562_v47  ;;  %vm427_vm0 = vcmask 605184  }
 0x152   :  { %564 = vmatprep.subr.bf16.mxu1 %v620_v3 }
 0x155   :  { %566 = vmatpush3.bf16.msra.mxu1 %v565_v49 }
 0x156   :  { %567 = vmatprep.subr.bf16.mxu1 %v620_v3 }
 0x159   :  { %569 = vmatpush3.bf16.msra.mxu1 %v568_v52 }
 0x15a   :  { %570 = vmatprep.subr.bf16.mxu1 %v620_v3 }
 0x15d   :  { %572 = vmatpush3.bf16.msra.mxu1 %v571_v55 }
 0x15e   :  { %573 = vmatprep.subr.bf16.mxu1 %v620_v3  ;;  %v335_v3 = vld [vmem:[%s809_s3 + $0xd0] sm:$0xff]  ;;  %s627_s3 = smov [#allocation2]  }
 0x15f   :  { %542 = vmatpush3.msra.mxu0 %v335_v3  ;;  %s436_s23 = sshll.u32 %s627_s3, 4  ;;  %s437_s23 = int_to_ptr.vmem [resolvable:$true] %s436_s23 }
 0x160   :  { %s595_s24 = scalar_lea.vmem %s437_s23, 32  ;;  %p600_p1 = scmp.lt.s32.totalorder %s437_s23, %s437_s23 }
 0x161   :  { %575 = vmatpush3.bf16.msra.mxu1 %v574_v58  ;;  %p596_p0 = scmp.ne.s32.totalorder %s437_s23, %s595_s24  ;;  %p601_p2 = scmp.lt.s32.totalorder %s595_s24, %s595_s24 }
 0x163   :  { %p602_p3 = por %p601_p2, %p600_p1 }
 0x165   :  { %p603_p4 = pnand %p602_p3, %p596_p0 }
 0x223   :  { %v192_v30 = vpop.f32.mrb[0].mxu1 }
 0x224   :  { %v509_v31 = vpop.f32.mrb[1].mxu1  ;;  %v199_v32 = vsel %vm198_vm8, %v192_v30, -inf }
 0x225   :  { %200 = vmax.xlane.f32.xlu0 %v199_v32 }
 0x2b2   :  { %v201_v35 = vpop.xlane.xlu0 %200 }
 0x2b3   :  { %vm202_vm9 = vcmp.eq.f32.partialorder %v192_v30, %v201_v35  ;;  %v222_v2 = vsub.f32 %v192_v30, %v201_v35 }
 0x2b4   :  { %v203_v36 = vsel %vm202_vm9, %v197_v34, 8 }
 0x2b5   :  { %v204_v37 = vsel %vm198_vm8, %v203_v36, 2147483647  ;;  %v223_v4 = vmul.f32 1.442695, %v222_v2 }
 0x2b6   :  { %v206_v38 = vshra.s32 %v204_v37, 16  ;;  %v205_v40 = vand.u32 65535, %v204_v37 }
 0x2b7   :  { %591 = vpow2.f32 %v223_v4 }
 0x2b8   :  { %v208_v39 = vcvt.s32.f32 %v206_v38  ;;  %v207_v42 = vcvt.s32.f32 %v205_v40 }
 0x2ba   :  { %209 = vmin.xlane.f32.xlu1 %v208_v39 }
 0x2c1   :  { %v592_v5 = vpop.eup %591 }
 0x2c2   :  { %v225_v6 = vsel %vm198_vm8, %v592_v5, 0.0 }
 0x347   :  { %v210_v41 = vpop.xlane.xlu1 %209 }
 0x348   :  { %vm211_vm10 = vcmp.eq.f32.partialorder %v208_v39, %v210_v41  ;;  %v216_v59 = vcvt.f32.s32 %v210_v41 }
 0x349   :  { %v212_v43 = vsel %vm211_vm10, %v207_v42, inf }
 0x34a   :  { %213 = vmin.xlane.f32.xlu1 %v212_v43  ;;  %v217_v61 = vshll.u32 %v216_v59, 16 }
 0x3d7   :  { %v214_v60 = vpop.xlane.xlu1 %213 }
 0x3d8   :  { %v215_v62 = vcvt.f32.s32 %v214_v60 }
 0x3da   :  { %v754_v63 = vadd.s32 %v217_v61, %v215_v62 }
 0x3dc   :  { %vm219_vm11 = vcmp.eq.s32.totalorder %v197_v34, %v754_v63  ;;  %v409_v33 = vcvt.s32.f32 %v754_v63 }
 0x3dd   :  { %v446_v0 = vsel %vm219_vm11, 1.0, %v622_v8 }
 0x3de   :  { %231 = vrot.lane.b32.xlu1 %v446_v0, %s623_s9 }
 0x3e2   :  { %235 = vrot.lane.b32.xlu1 %v20_v1, %s624_s12 }
 0x406   :  { %226 = vadd.xlane.f32.xlu1 %v225_v6 }
 0x450   :  { %v232_v7 = vpop.permute.xlu1 %231 }
 0x451   :  { %v238_v9 = vsel %vm113_vm5, %v710_v26, %v232_v7 }
 0x454   :  { %v236_v10 = vpop.permute.xlu1 %235 }
 0x455   :  { %v239_v11 = vsel %vm122_vm7, %v238_v9, %v236_v10 }
 0x456   :  { %v241_v12 = vsel %vm240_vm12, %v239_v11, 1.0 }
 0x457   :  { %v243_v13 = vsel %vm242_vm13, %v241_v12, 0.0 }
 0x458   :  { %531 = vmatmul.mubr.msk.f32.vlgmr.msra.gmra.mrb[2].mxu1 %vm254_vm14, %v243_v13 }
 0x493   :  { %v227_v14 = vpop.xlane.xlu1 %226 }
 0x494   :  { %593 = vrcp.f32 %v227_v14 }
 0x49e   :  { %v594_v18 = vpop.eup %593 }
 0x49f   :  { %v229_v19 = vmul.f32 %v594_v18, %v592_v5 }
 0x4a1   :  { %415 = vrot.lane.b32.xlu0 %v229_v19, %s625_s15 }
 0x513   :  { %v416_v30 = vpop.permute.xlu0 %415 }
 0x52b   :  { %v324_v23 = vpop.f32.mrb[2].mxu1 }
 0x52c   :  { %v328_v24 = vmax.f32 %v324_v23, 0.0  ;;  %v532_v25 = vpop.f32.mrb[3].mxu1 }
 0x52e   :  { %v329_v27 = vsel %vm113_vm5, %v328_v24, 1.0  ;;  %411 = vrot.lane.b32.xlu0 %v328_v24, %s623_s9 }
 0x52f   :  { %v330_v28 = vsel %vm115_vm6, %v329_v27, 0.0 }
 0x530   :  { %544 = vmatmul.mubr.msk.f32.vlgmr.msra.gmra.mrb[2].mxu0 %vm122_vm7, %v330_v28 }
 0x5a0   :  { %v412_v31 = vpop.permute.xlu0 %411 }
 0x5a1   :  { %v422_v32 = vsel %vm113_vm5, %v710_v26, %v412_v31 }
 0x5a2   :  { %v424_v34 = vsel %vm423_vm15, %v422_v32, %v416_v30 }
 0x603   :  { %v405_v29 = vpop.f32.mrb[2].mxu0 }
 0x604   :  { %419 = vrot.lane.b32.xlu0 %v405_v29, %s626_s22  ;;  %v545_v8 = vpop.f32.mrb[3].mxu0 }
 0x676   :  { %v420_v35 = vpop.permute.xlu0 %419 }
 0x677   :  { %v425_v36 = vsel %vm240_vm12, %v424_v34, %v420_v35 }
 0x678   :  { %v426_v37 = vsel %vm242_vm13, %v425_v36, %v409_v33 }
 0x679   :  { %v428_v38 = vsel %vm427_vm0, %v426_v37, 0.0 }
 0x67a   :  { %429 = vst [vmem:[#allocation2] sm:$0x3] %v428_v38 }
 0x67b   :  { %606 = shalt.err (!%p603_p4)
}
 0x67c   :  { %s607_s26 = scalar_lea.hbm %s810_s4, 32 }
 0x67d   :  { %p608_p5 = scmp.ne.s32.totalorder %s810_s4, %s607_s26  ;;  %p611_p6 = scmp.lt.u32.totalorder %s607_s26, %s810_s4 }
 0x67f   :  { %p613_p7 = pnand %p611_p6, %p608_p5 }
 0x681   :  { %616 = shalt.err (!%p613_p7)
}
 0x682   :  { %439 = dma.vmem_to_hbm [thread:$0]  %s437_s23, 32, %s810_s4, [#allocation3]  }
 0x683   :  { %617 = dma.done.wait [#allocation3], 32  }
 0x684   :  { %618 = vsyncadd [#allocation3], 4294967264 }
 0x685   :  { %443 = vsyncpa [#allocation3], 1 }

</bundles_post_ra>
